<compile_context>
chip_gen: v7x
topology: tpu7x:2x2x1
jax: 0.10.0
libtpu: 0.0.40
codegen_flags: <defaults>
</compile_context>

<pallas_src>
import functools

import jax
import jax.numpy as jnp
import numpy as np
from jax.experimental import pallas as pl
from jax.experimental.pallas import tpu as pltpu


# ----------------------------------------------------------------------------
# Kernel
# ----------------------------------------------------------------------------
def _iaff_kernel(x_ref, y_ref, wic_ref, wci_ref, bi_ref, bc_ref, out_ref, *,
                 use_mxu):
    """One grid step: a block of `nb` samples, channel-major, lane-dense.

    x_ref / y_ref / out_ref : (nb, C, HW)   HW on the 128-lane axis
    wic_ref : (4, I, C)  [w21_aff, w11_aff, w21_cam2, w11_cam2]
    wci_ref : (4, C, I)  [w22_aff, w12_aff, w22_cam2, w12_cam2]
    bi_ref  : (4, I, 1)  [b21_aff, b11_aff, b21_cam2, b11_cam2]
    bc_ref  : (4, C, 1)  [b22_aff, b12_aff, b22_cam2, b12_cam2]

    NOTE: block shapes with sublane dims of 4/2/1 are legal only because they
    equal the full array dims; any future partial-C tiling must round to
    multiples of 8 (f32) / 16 (bf16).
    """
    x = x_ref[...]                       # (nb, C, HW) f32
    y = y_ref[...]
    s = x + y                            # AFF / MS_CAM#1 input  X + Y
    d = x - y                            # shared by both blends: Z = Y + M*(X-Y)

    w21a, w11a, w21c, w11c = wic_ref[0], wic_ref[1], wic_ref[2], wic_ref[3]
    w22a, w12a, w22c, w12c = wci_ref[0], wci_ref[1], wci_ref[2], wci_ref[3]
    b21a, b11a, b21c, b11c = bi_ref[0], bi_ref[1], bi_ref[2], bi_ref[3]
    b22a, b12a, b22c, b12c = bc_ref[0], bc_ref[1], bc_ref[2], bc_ref[3]

    def mix_vpu(inp, w, b):
        # inp: (nb, Cin, L); w: (Cout, Cin); b: (Cout, 1) -> (nb, Cout, L).
        # Broadcast-multiply + sublane reduce on the VPU/XLU: no near-empty MXU
        # pushes for tiny Cin/Cout and no degenerate M=1 matmul for the global
        # branch.
        prod = w[None, :, :, None] * inp[:, None, :, :]     # (nb, Cout, Cin, L)
        return jnp.sum(prod, axis=2) + b[None]              # (nb, Cout, L)

    def mix_mxu(inp, w, b):
        # Batched MXU matmul with bf16 operands and f32 accumulation; used only
        # at realistic C (>= 64) where the local branch is matmul-bound.
        nb_ = inp.shape[0]
        wb = jnp.broadcast_to(w.astype(jnp.bfloat16)[None], (nb_,) + w.shape)
        acc = jnp.einsum("noc,ncl->nol", wb, inp.astype(jnp.bfloat16),
                         preferred_element_type=jnp.float32)
        return acc + b[None]

    local_mix = mix_mxu if use_mxu else mix_vpu

    def ms_cam(inp, w_l1, b_l1, w_l2, b_l2, w_g1, b_g1, w_g2, b_g2):
        # Local branch: conv+bn -> relu -> conv+bn at full resolution.
        l = local_mix(inp, w_l1, b_l1)
        l = local_mix(jnp.maximum(l, 0.0), w_l2, b_l2)       # (nb, C, HW)
        # Global branch: GAP over all samples at once (one lane reduction),
        # then two tiny channel mixes on (nb, C, 1), always VPU.
        g = jnp.mean(inp, axis=2, keepdims=True)             # (nb, C, 1)
        g = mix_vpu(g, w_g1, b_g1)
        g = mix_vpu(jnp.maximum(g, 0.0), w_g2, b_g2)         # (nb, C, 1)
        return inp * jax.nn.sigmoid(g + l)                   # (nb, C, HW)

    # MS_CAM#1 (inside AFF) on X+Y, blend, MS_CAM#2 on Z1, final blend.
    m1 = ms_cam(s, w21a, b21a, w22a, b22a, w11a, b11a, w12a, b12a)
    z1 = y + m1 * d                                          # AFF output, kept in registers
    m2 = ms_cam(z1, w21c, b21c, w22c, b22c, w11c, b11c, w12c, b12c)
    out_ref[...] = y + m2 * d                                # single lane-dense store


# ----------------------------------------------------------------------------
# Wrapper (BlockSpec layout + parameter packing + pallas_call)
# ----------------------------------------------------------------------------
def _pack_params(pa, pc):
    """Pack both MS_CAMs' folded params into 4 stacked arrays."""
    wic = jnp.stack([pa["w21"], pa["w11"], pc["w21"], pc["w11"]])       # (4, I, C)
    wci = jnp.stack([pa["w22"], pa["w12"], pc["w22"], pc["w12"]])       # (4, C, I)
    bi = jnp.stack([pa["b21"][:, None], pa["b11"][:, None],
                    pc["b21"][:, None], pc["b11"][:, None]])            # (4, I, 1)
    bc = jnp.stack([pa["b22"][:, None], pa["b12"][:, None],
                    pc["b22"][:, None], pc["b12"][:, None]])            # (4, C, 1)
    return wic, wci, bi, bc


def _choose_samples_per_block(N, C, HW, vmem_budget_bytes=40 << 20):
    """Pick nb so ~10 live f32 (nb, C, HW) slabs fit the budget (v7x-safe),
    while keeping >= 2 grid steps for pipelining / megacore when N >= 2."""
    per_sample_bytes = C * HW * 4 * 10
    cap = max(1, vmem_budget_bytes // per_sample_bytes)
    nb = min(max(1, N // 2), cap)
    while N % nb:                       # make nb a divisor of N
        nb -= 1
    return nb


def iaff_pallas(X_nchw, Y_nchw, params_aff, params_cam2, *,
                samples_per_block=None):
    """X/Y: (N, C, H, W) float32 (PyTorch layout).  Returns (N, C, H, W)."""
    N, C, H, W = X_nchw.shape
    HW = H * W

    # Free reshapes only (no transpose): NCHW -> (N, C, HW); channel-major with
    # HW on the lane axis is expressed by the BlockSpec, not by host-side
    # layout passes.
    x = X_nchw.reshape(N, C, HW)
    y = Y_nchw.reshape(N, C, HW)

    if samples_per_block is None:
        samples_per_block = _choose_samples_per_block(N, C, HW)
    nb = samples_per_block
    assert N % nb == 0, "samples_per_block must divide N"
    num_blocks = N // nb

    wic, wci, bi, bc = _pack_params(params_aff, params_cam2)

    use_mxu = C >= 64   # toy C=4 -> VPU channel mixes; realistic C -> bf16 MXU

    data_spec = pl.BlockSpec((nb, C, HW), lambda i: (i, 0, 0))
    param_specs = [pl.BlockSpec(p.shape, lambda i: (0, 0, 0))
                   for p in (wic, wci, bi, bc)]

    slab_bytes = nb * C * HW * 4
    # Keep the explicit limit below v7x's 64 MiB physical VMEM.
    vmem_limit = int(min(56 << 20, max(32 << 20, 12 * slab_bytes)))

    kern = functools.partial(_iaff_kernel, use_mxu=use_mxu)

    out = pl.pallas_call(
        kern,
        out_shape=jax.ShapeDtypeStruct((N, C, HW), jnp.float32),
        grid=(num_blocks,),
        in_specs=[data_spec, data_spec] + param_specs,
        out_specs=data_spec,
        compiler_params=pltpu.CompilerParams(
            dimension_semantics=("parallel",),
            vmem_limit_bytes=vmem_limit),
    )(x, y, wic, wci, bi, bc)

    return out.reshape(N, C, H, W)


# ----------------------------------------------------------------------------
# Parameter construction (deterministic, independent keys) + BN folding
# ----------------------------------------------------------------------------
def _fold_conv_bn(w, gamma, beta, mean, var, eps=1e-5):
    """w: (Cout, Cin) 1x1-conv weight.  Returns folded (w', b') with b' (Cout,)."""
    scale = gamma / jnp.sqrt(var + eps)
    w_f = w * scale[:, None]
    b_f = beta - mean * scale
    return w_f.astype(jnp.float32), b_f.astype(jnp.float32)


def make_ms_cam_params(key, C, r):
    interdim = max(C // r, 1)
    keys = jax.random.split(key, 8)

    def conv(k, cout, cin):
        # PyTorch Conv2d(cin, cout, 1, bias=False) weight squeezed -> (cout, cin)
        return 0.3 * jax.random.normal(k, (cout, cin), jnp.float32)

    def bn(k, c):
        kg, kb, km, kv = jax.random.split(k, 4)
        gamma = 1.0 + 0.1 * jax.random.normal(kg, (c,), jnp.float32)
        beta = 0.1 * jax.random.normal(kb, (c,), jnp.float32)
        mean = 0.1 * jax.random.normal(km, (c,), jnp.float32)
        var = jnp.abs(jax.random.normal(kv, (c,), jnp.float32)) + 0.5
        return gamma, beta, mean, var

    w11, b11 = _fold_conv_bn(conv(keys[0], interdim, C), *bn(keys[1], interdim))
    w12, b12 = _fold_conv_bn(conv(keys[2], C, interdim), *bn(keys[3], C))
    w21, b21 = _fold_conv_bn(conv(keys[4], interdim, C), *bn(keys[5], interdim))
    w22, b22 = _fold_conv_bn(conv(keys[6], C, interdim), *bn(keys[7], C))
    return dict(w11=w11, b11=b11, w12=w12, b12=b12,
                w21=w21, b21=b21, w22=w22, b22=b22)


# ----------------------------------------------------------------------------
# Pure-JAX reference (same folded params), (N, C, HW) layout
# ----------------------------------------------------------------------------
def _ms_cam_ref(x, p):  # x: (N, C, HW)
    g = jnp.mean(x, axis=2, keepdims=True)                                 # (N, C, 1)
    g = jnp.maximum(jnp.einsum("ic,ncs->nis", p["w11"], g)
                    + p["b11"][None, :, None], 0.0)
    g = jnp.einsum("ci,nis->ncs", p["w12"], g) + p["b12"][None, :, None]   # (N, C, 1)
    l = jnp.maximum(jnp.einsum("ic,ncs->nis", p["w21"], x)
                    + p["b21"][None, :, None], 0.0)
    l = jnp.einsum("ci,nis->ncs", p["w22"], l) + p["b22"][None, :, None]   # (N, C, HW)
    return x * jax.nn.sigmoid(g + l)


def iaff_ref(x, y, pa, pc):  # (N, C, HW)
    m1 = _ms_cam_ref(x + y, pa)
    z1 = m1 * x + (1.0 - m1) * y
    m2 = _ms_cam_ref(z1, pc)
    return m2 * x + (1.0 - m2) * y


# ----------------------------------------------------------------------------
if __name__ == "__main__":
    N, C, H, W, r = 2, 4, 16, 16, 2

    key = jax.random.PRNGKey(0)
    kx, ky, kpa, kpc = jax.random.split(key, 4)

    # PyTorch-style NCHW inputs
    X_nchw = jax.random.normal(kx, (N, C, H, W), jnp.float32)
    Y_nchw = jax.random.normal(ky, (N, C, H, W), jnp.float32)

    params_aff = make_ms_cam_params(kpa, C, r)     # MS_CAM inside AFF
    params_cam2 = make_ms_cam_params(kpc, C, r)    # MS_CAM2

    Z = iaff_pallas(X_nchw, Y_nchw, params_aff, params_cam2)
    Z = jax.block_until_ready(Z)
    assert Z.shape == X_nchw.shape

    ref = iaff_ref(X_nchw.reshape(N, C, H * W), Y_nchw.reshape(N, C, H * W),
                   params_aff, params_cam2).reshape(N, C, H, W)
    np.testing.assert_allclose(np.asarray(Z), np.asarray(ref),
                               rtol=1e-3, atol=1e-3)

    print("KERNEL_OK")
</pallas_src>

<mosaic_0001>
module attributes {stable_mosaic.version = 11 : i64} {
  func.func @_iaff_kernel(%arg0: i32, %arg1: memref<1x4x256xf32, #tpu.memory_space<vmem>>, %arg2: memref<1x4x256xf32, #tpu.memory_space<vmem>>, %arg3: memref<4x2x4xf32, #tpu.memory_space<vmem>>, %arg4: memref<4x4x2xf32, #tpu.memory_space<vmem>>, %arg5: memref<4x2x1xf32, #tpu.memory_space<vmem>>, %arg6: memref<4x4x1xf32, #tpu.memory_space<vmem>>, %arg7: memref<1x4x256xf32, #tpu.memory_space<vmem>>) attributes {dimension_semantics = [#tpu.dimension_semantics<parallel>], iteration_bounds = array<i64: 2>, scalar_prefetch = 0 : i64, scratch_operands = 0 : i64, tpu.core_type = #tpu.core_type<tc>, window_params = [{transform_indices = @transform_0, window_bounds = array<i64: 1, 4, 256>}, {transform_indices = @transform_1, window_bounds = array<i64: 1, 4, 256>}, {pipeline_mode = #tpu.pipeline_mode<synchronous>, transform_indices = @transform_2, window_bounds = array<i64: 4, 2, 4>}, {pipeline_mode = #tpu.pipeline_mode<synchronous>, transform_indices = @transform_3, window_bounds = array<i64: 4, 4, 2>}, {pipeline_mode = #tpu.pipeline_mode<synchronous>, transform_indices = @transform_4, window_bounds = array<i64: 4, 2, 1>}, {pipeline_mode = #tpu.pipeline_mode<synchronous>, transform_indices = @transform_5, window_bounds = array<i64: 4, 4, 1>}, {transform_indices = @transform_6, window_bounds = array<i64: 1, 4, 256>}]} {
    %c0 = arith.constant 0 : index
    %c0_0 = arith.constant 0 : index
    %c0_1 = arith.constant 0 : index
    %0 = vector.load %arg1[%c0, %c0_0, %c0_1] : memref<1x4x256xf32, #tpu.memory_space<vmem>>, vector<1x4x256xf32>
    %c0_2 = arith.constant 0 : index
    %c0_3 = arith.constant 0 : index
    %c0_4 = arith.constant 0 : index
    %1 = vector.load %arg2[%c0_2, %c0_3, %c0_4] : memref<1x4x256xf32, #tpu.memory_space<vmem>>, vector<1x4x256xf32>
    %2 = arith.addf %0, %1 : vector<1x4x256xf32>
    %3 = arith.subf %0, %1 : vector<1x4x256xf32>
    %c0_5 = arith.constant 0 : index
    %c0_6 = arith.constant 0 : index
    %c0_7 = arith.constant 0 : index
    %4 = vector.load %arg3[%c0_5, %c0_6, %c0_7] : memref<4x2x4xf32, #tpu.memory_space<vmem>>, vector<1x2x4xf32>
    %5 = vector.shape_cast %4 : vector<1x2x4xf32> to vector<2x4xf32>
    %c1 = arith.constant 1 : index
    %c0_8 = arith.constant 0 : index
    %c0_9 = arith.constant 0 : index
    %6 = vector.load %arg3[%c1, %c0_8, %c0_9] : memref<4x2x4xf32, #tpu.memory_space<vmem>>, vector<1x2x4xf32>
    %7 = vector.shape_cast %6 : vector<1x2x4xf32> to vector<2x4xf32>
    %c2 = arith.constant 2 : index
    %c0_10 = arith.constant 0 : index
    %c0_11 = arith.constant 0 : index
    %8 = vector.load %arg3[%c2, %c0_10, %c0_11] : memref<4x2x4xf32, #tpu.memory_space<vmem>>, vector<1x2x4xf32>
    %9 = vector.shape_cast %8 : vector<1x2x4xf32> to vector<2x4xf32>
    %c3 = arith.constant 3 : index
    %c0_12 = arith.constant 0 : index
    %c0_13 = arith.constant 0 : index
    %10 = vector.load %arg3[%c3, %c0_12, %c0_13] : memref<4x2x4xf32, #tpu.memory_space<vmem>>, vector<1x2x4xf32>
    %11 = vector.shape_cast %10 : vector<1x2x4xf32> to vector<2x4xf32>
    %c0_14 = arith.constant 0 : index
    %c0_15 = arith.constant 0 : index
    %c0_16 = arith.constant 0 : index
    %12 = vector.load %arg4[%c0_14, %c0_15, %c0_16] : memref<4x4x2xf32, #tpu.memory_space<vmem>>, vector<1x4x2xf32>
    %13 = vector.shape_cast %12 : vector<1x4x2xf32> to vector<4x2xf32>
    %c1_17 = arith.constant 1 : index
    %c0_18 = arith.constant 0 : index
    %c0_19 = arith.constant 0 : index
    %14 = vector.load %arg4[%c1_17, %c0_18, %c0_19] : memref<4x4x2xf32, #tpu.memory_space<vmem>>, vector<1x4x2xf32>
    %15 = vector.shape_cast %14 : vector<1x4x2xf32> to vector<4x2xf32>
    %c2_20 = arith.constant 2 : index
    %c0_21 = arith.constant 0 : index
    %c0_22 = arith.constant 0 : index
    %16 = vector.load %arg4[%c2_20, %c0_21, %c0_22] : memref<4x4x2xf32, #tpu.memory_space<vmem>>, vector<1x4x2xf32>
    %17 = vector.shape_cast %16 : vector<1x4x2xf32> to vector<4x2xf32>
    %c3_23 = arith.constant 3 : index
    %c0_24 = arith.constant 0 : index
    %c0_25 = arith.constant 0 : index
    %18 = vector.load %arg4[%c3_23, %c0_24, %c0_25] : memref<4x4x2xf32, #tpu.memory_space<vmem>>, vector<1x4x2xf32>
    %19 = vector.shape_cast %18 : vector<1x4x2xf32> to vector<4x2xf32>
    %c0_26 = arith.constant 0 : index
    %c0_27 = arith.constant 0 : index
    %c0_28 = arith.constant 0 : index
    %20 = vector.load %arg5[%c0_26, %c0_27, %c0_28] : memref<4x2x1xf32, #tpu.memory_space<vmem>>, vector<1x2x1xf32>
    %21 = vector.shape_cast %20 : vector<1x2x1xf32> to vector<2x1xf32>
    %c1_29 = arith.constant 1 : index
    %c0_30 = arith.constant 0 : index
    %c0_31 = arith.constant 0 : index
    %22 = vector.load %arg5[%c1_29, %c0_30, %c0_31] : memref<4x2x1xf32, #tpu.memory_space<vmem>>, vector<1x2x1xf32>
    %23 = vector.shape_cast %22 : vector<1x2x1xf32> to vector<2x1xf32>
    %c2_32 = arith.constant 2 : index
    %c0_33 = arith.constant 0 : index
    %c0_34 = arith.constant 0 : index
    %24 = vector.load %arg5[%c2_32, %c0_33, %c0_34] : memref<4x2x1xf32, #tpu.memory_space<vmem>>, vector<1x2x1xf32>
    %25 = vector.shape_cast %24 : vector<1x2x1xf32> to vector<2x1xf32>
    %c3_35 = arith.constant 3 : index
    %c0_36 = arith.constant 0 : index
    %c0_37 = arith.constant 0 : index
    %26 = vector.load %arg5[%c3_35, %c0_36, %c0_37] : memref<4x2x1xf32, #tpu.memory_space<vmem>>, vector<1x2x1xf32>
    %27 = vector.shape_cast %26 : vector<1x2x1xf32> to vector<2x1xf32>
    %c0_38 = arith.constant 0 : index
    %c0_39 = arith.constant 0 : index
    %c0_40 = arith.constant 0 : index
    %28 = vector.load %arg6[%c0_38, %c0_39, %c0_40] : memref<4x4x1xf32, #tpu.memory_space<vmem>>, vector<1x4x1xf32>
    %29 = vector.shape_cast %28 : vector<1x4x1xf32> to vector<4x1xf32>
    %c1_41 = arith.constant 1 : index
    %c0_42 = arith.constant 0 : index
    %c0_43 = arith.constant 0 : index
    %30 = vector.load %arg6[%c1_41, %c0_42, %c0_43] : memref<4x4x1xf32, #tpu.memory_space<vmem>>, vector<1x4x1xf32>
    %31 = vector.shape_cast %30 : vector<1x4x1xf32> to vector<4x1xf32>
    %c2_44 = arith.constant 2 : index
    %c0_45 = arith.constant 0 : index
    %c0_46 = arith.constant 0 : index
    %32 = vector.load %arg6[%c2_44, %c0_45, %c0_46] : memref<4x4x1xf32, #tpu.memory_space<vmem>>, vector<1x4x1xf32>
    %33 = vector.shape_cast %32 : vector<1x4x1xf32> to vector<4x1xf32>
    %c3_47 = arith.constant 3 : index
    %c0_48 = arith.constant 0 : index
    %c0_49 = arith.constant 0 : index
    %34 = vector.load %arg6[%c3_47, %c0_48, %c0_49] : memref<4x4x1xf32, #tpu.memory_space<vmem>>, vector<1x4x1xf32>
    %35 = vector.shape_cast %34 : vector<1x4x1xf32> to vector<4x1xf32>
    %36 = vector.shape_cast %5 : vector<2x4xf32> to vector<1x2x4x1xf32>
    %37 = vector.shape_cast %2 : vector<1x4x256xf32> to vector<1x1x4x256xf32>
    %38 = vector.broadcast %36 : vector<1x2x4x1xf32> to vector<1x2x4x256xf32>
    %39 = vector.broadcast %37 : vector<1x1x4x256xf32> to vector<1x2x4x256xf32>
    %40 = arith.mulf %38, %39 : vector<1x2x4x256xf32>
    %cst = arith.constant dense<0.000000e+00> : vector<1x2x256xf32>
    %41 = vector.multi_reduction <add>, %40, %cst [2] : vector<1x2x4x256xf32> to vector<1x2x256xf32>
    %42 = vector.shape_cast %21 : vector<2x1xf32> to vector<1x2x1xf32>
    %43 = vector.broadcast %42 : vector<1x2x1xf32> to vector<1x2x256xf32>
    %44 = arith.addf %41, %43 : vector<1x2x256xf32>
    %cst_50 = arith.constant 0.000000e+00 : f32
    %45 = vector.broadcast %cst_50 : f32 to vector<1x2x256xf32>
    %46 = arith.maximumf %44, %45 : vector<1x2x256xf32>
    %47 = vector.shape_cast %13 : vector<4x2xf32> to vector<1x4x2x1xf32>
    %48 = vector.shape_cast %46 : vector<1x2x256xf32> to vector<1x1x2x256xf32>
    %49 = vector.broadcast %47 : vector<1x4x2x1xf32> to vector<1x4x2x256xf32>
    %50 = vector.broadcast %48 : vector<1x1x2x256xf32> to vector<1x4x2x256xf32>
    %51 = arith.mulf %49, %50 : vector<1x4x2x256xf32>
    %cst_51 = arith.constant dense<0.000000e+00> : vector<1x4x256xf32>
    %52 = vector.multi_reduction <add>, %51, %cst_51 [2] : vector<1x4x2x256xf32> to vector<1x4x256xf32>
    %53 = vector.shape_cast %29 : vector<4x1xf32> to vector<1x4x1xf32>
    %54 = vector.broadcast %53 : vector<1x4x1xf32> to vector<1x4x256xf32>
    %55 = arith.addf %52, %54 : vector<1x4x256xf32>
    %cst_52 = arith.constant dense<0.000000e+00> : vector<1x4xf32>
    %56 = vector.multi_reduction <add>, %2, %cst_52 [2] : vector<1x4x256xf32> to vector<1x4xf32>
    %57 = vector.shape_cast %56 : vector<1x4xf32> to vector<1x4x1xf32>
    %cst_53 = arith.constant 2.560000e+02 : f32
    %58 = vector.broadcast %cst_53 : f32 to vector<1x4x1xf32>
    %59 = arith.divf %57, %58 : vector<1x4x1xf32>
    %60 = vector.shape_cast %7 : vector<2x4xf32> to vector<1x2x4x1xf32>
    %61 = vector.shape_cast %59 : vector<1x4x1xf32> to vector<1x1x4x1xf32>
    %62 = vector.broadcast %61 : vector<1x1x4x1xf32> to vector<1x2x4x1xf32>
    %63 = arith.mulf %60, %62 : vector<1x2x4x1xf32>
    %cst_54 = arith.constant dense<0.000000e+00> : vector<1x2x1xf32>
    %64 = vector.multi_reduction <add>, %63, %cst_54 [2] : vector<1x2x4x1xf32> to vector<1x2x1xf32>
    %65 = vector.shape_cast %23 : vector<2x1xf32> to vector<1x2x1xf32>
    %66 = arith.addf %64, %65 : vector<1x2x1xf32>
    %cst_55 = arith.constant 0.000000e+00 : f32
    %67 = vector.broadcast %cst_55 : f32 to vector<1x2x1xf32>
    %68 = arith.maximumf %66, %67 : vector<1x2x1xf32>
    %69 = vector.shape_cast %15 : vector<4x2xf32> to vector<1x4x2x1xf32>
    %70 = vector.shape_cast %68 : vector<1x2x1xf32> to vector<1x1x2x1xf32>
    %71 = vector.broadcast %70 : vector<1x1x2x1xf32> to vector<1x4x2x1xf32>
    %72 = arith.mulf %69, %71 : vector<1x4x2x1xf32>
    %cst_56 = arith.constant dense<0.000000e+00> : vector<1x4x1xf32>
    %73 = vector.multi_reduction <add>, %72, %cst_56 [2] : vector<1x4x2x1xf32> to vector<1x4x1xf32>
    %74 = vector.shape_cast %31 : vector<4x1xf32> to vector<1x4x1xf32>
    %75 = arith.addf %73, %74 : vector<1x4x1xf32>
    %76 = vector.broadcast %75 : vector<1x4x1xf32> to vector<1x4x256xf32>
    %77 = arith.addf %76, %55 : vector<1x4x256xf32>
    %78 = arith.negf %77 : vector<1x4x256xf32>
    %79 = math.exp %78 : vector<1x4x256xf32>
    %cst_57 = arith.constant 1.000000e+00 : f32
    %80 = vector.broadcast %cst_57 : f32 to vector<1x4x256xf32>
    %81 = arith.addf %80, %79 : vector<1x4x256xf32>
    %82 = arith.divf %80, %81 : vector<1x4x256xf32>
    %83 = arith.mulf %2, %82 : vector<1x4x256xf32>
    %84 = arith.mulf %83, %3 : vector<1x4x256xf32>
    %85 = arith.addf %1, %84 : vector<1x4x256xf32>
    %86 = vector.shape_cast %9 : vector<2x4xf32> to vector<1x2x4x1xf32>
    %87 = vector.shape_cast %85 : vector<1x4x256xf32> to vector<1x1x4x256xf32>
    %88 = vector.broadcast %86 : vector<1x2x4x1xf32> to vector<1x2x4x256xf32>
    %89 = vector.broadcast %87 : vector<1x1x4x256xf32> to vector<1x2x4x256xf32>
    %90 = arith.mulf %88, %89 : vector<1x2x4x256xf32>
    %cst_58 = arith.constant dense<0.000000e+00> : vector<1x2x256xf32>
    %91 = vector.multi_reduction <add>, %90, %cst_58 [2] : vector<1x2x4x256xf32> to vector<1x2x256xf32>
    %92 = vector.shape_cast %25 : vector<2x1xf32> to vector<1x2x1xf32>
    %93 = vector.broadcast %92 : vector<1x2x1xf32> to vector<1x2x256xf32>
    %94 = arith.addf %91, %93 : vector<1x2x256xf32>
    %cst_59 = arith.constant 0.000000e+00 : f32
    %95 = vector.broadcast %cst_59 : f32 to vector<1x2x256xf32>
    %96 = arith.maximumf %94, %95 : vector<1x2x256xf32>
    %97 = vector.shape_cast %17 : vector<4x2xf32> to vector<1x4x2x1xf32>
    %98 = vector.shape_cast %96 : vector<1x2x256xf32> to vector<1x1x2x256xf32>
    %99 = vector.broadcast %97 : vector<1x4x2x1xf32> to vector<1x4x2x256xf32>
    %100 = vector.broadcast %98 : vector<1x1x2x256xf32> to vector<1x4x2x256xf32>
    %101 = arith.mulf %99, %100 : vector<1x4x2x256xf32>
    %cst_60 = arith.constant dense<0.000000e+00> : vector<1x4x256xf32>
    %102 = vector.multi_reduction <add>, %101, %cst_60 [2] : vector<1x4x2x256xf32> to vector<1x4x256xf32>
    %103 = vector.shape_cast %33 : vector<4x1xf32> to vector<1x4x1xf32>
    %104 = vector.broadcast %103 : vector<1x4x1xf32> to vector<1x4x256xf32>
    %105 = arith.addf %102, %104 : vector<1x4x256xf32>
    %cst_61 = arith.constant dense<0.000000e+00> : vector<1x4xf32>
    %106 = vector.multi_reduction <add>, %85, %cst_61 [2] : vector<1x4x256xf32> to vector<1x4xf32>
    %107 = vector.shape_cast %106 : vector<1x4xf32> to vector<1x4x1xf32>
    %cst_62 = arith.constant 2.560000e+02 : f32
    %108 = vector.broadcast %cst_62 : f32 to vector<1x4x1xf32>
    %109 = arith.divf %107, %108 : vector<1x4x1xf32>
    %110 = vector.shape_cast %11 : vector<2x4xf32> to vector<1x2x4x1xf32>
    %111 = vector.shape_cast %109 : vector<1x4x1xf32> to vector<1x1x4x1xf32>
    %112 = vector.broadcast %111 : vector<1x1x4x1xf32> to vector<1x2x4x1xf32>
    %113 = arith.mulf %110, %112 : vector<1x2x4x1xf32>
    %cst_63 = arith.constant dense<0.000000e+00> : vector<1x2x1xf32>
    %114 = vector.multi_reduction <add>, %113, %cst_63 [2] : vector<1x2x4x1xf32> to vector<1x2x1xf32>
    %115 = vector.shape_cast %27 : vector<2x1xf32> to vector<1x2x1xf32>
    %116 = arith.addf %114, %115 : vector<1x2x1xf32>
    %cst_64 = arith.constant 0.000000e+00 : f32
    %117 = vector.broadcast %cst_64 : f32 to vector<1x2x1xf32>
    %118 = arith.maximumf %116, %117 : vector<1x2x1xf32>
    %119 = vector.shape_cast %19 : vector<4x2xf32> to vector<1x4x2x1xf32>
    %120 = vector.shape_cast %118 : vector<1x2x1xf32> to vector<1x1x2x1xf32>
    %121 = vector.broadcast %120 : vector<1x1x2x1xf32> to vector<1x4x2x1xf32>
    %122 = arith.mulf %119, %121 : vector<1x4x2x1xf32>
    %cst_65 = arith.constant dense<0.000000e+00> : vector<1x4x1xf32>
    %123 = vector.multi_reduction <add>, %122, %cst_65 [2] : vector<1x4x2x1xf32> to vector<1x4x1xf32>
    %124 = vector.shape_cast %35 : vector<4x1xf32> to vector<1x4x1xf32>
    %125 = arith.addf %123, %124 : vector<1x4x1xf32>
    %126 = vector.broadcast %125 : vector<1x4x1xf32> to vector<1x4x256xf32>
    %127 = arith.addf %126, %105 : vector<1x4x256xf32>
    %128 = arith.negf %127 : vector<1x4x256xf32>
    %129 = math.exp %128 : vector<1x4x256xf32>
    %cst_66 = arith.constant 1.000000e+00 : f32
    %130 = vector.broadcast %cst_66 : f32 to vector<1x4x256xf32>
    %131 = arith.addf %130, %129 : vector<1x4x256xf32>
    %132 = arith.divf %130, %131 : vector<1x4x256xf32>
    %133 = arith.mulf %85, %132 : vector<1x4x256xf32>
    %134 = arith.mulf %133, %3 : vector<1x4x256xf32>
    %135 = arith.addf %1, %134 : vector<1x4x256xf32>
    %c0_67 = arith.constant 0 : index
    %c0_68 = arith.constant 0 : index
    %c0_69 = arith.constant 0 : index
    %136 = vector.load %arg7[%c0_67, %c0_68, %c0_69] : memref<1x4x256xf32, #tpu.memory_space<vmem>>, vector<1x4x256xf32>
    tpu.vector_store %arg7[%c0_67, %c0_68, %c0_69], %135 {strides = array<i32>} : memref<1x4x256xf32, #tpu.memory_space<vmem>>, vector<1x4x256xf32>,
    return
  }
  func.func @transform_0(%arg0: i32) -> (i32, i32, i32) {
    %c0_i32 = arith.constant 0 : i32
    %c0_i32_0 = arith.constant 0 : i32
    %c0_i32_1 = arith.constant 0 : i32
    return %arg0, %c0_i32, %c0_i32_0 : i32, i32, i32
  }
  func.func @transform_1(%arg0: i32) -> (i32, i32, i32) {
    %c0_i32 = arith.constant 0 : i32
    %c0_i32_0 = arith.constant 0 : i32
    %c0_i32_1 = arith.constant 0 : i32
    return %arg0, %c0_i32, %c0_i32_0 : i32, i32, i32
  }
  func.func @transform_2(%arg0: i32) -> (i32, i32, i32) {
    %c0_i32 = arith.constant 0 : i32
    %c0_i32_0 = arith.constant 0 : i32
    %c0_i32_1 = arith.constant 0 : i32
    %c0_i32_2 = arith.constant 0 : i32
    return %c0_i32, %c0_i32_0, %c0_i32_1 : i32, i32, i32
  }
  func.func @transform_3(%arg0: i32) -> (i32, i32, i32) {
    %c0_i32 = arith.constant 0 : i32
    %c0_i32_0 = arith.constant 0 : i32
    %c0_i32_1 = arith.constant 0 : i32
    %c0_i32_2 = arith.constant 0 : i32
    return %c0_i32, %c0_i32_0, %c0_i32_1 : i32, i32, i32
  }
  func.func @transform_4(%arg0: i32) -> (i32, i32, i32) {
    %c0_i32 = arith.constant 0 : i32
    %c0_i32_0 = arith.constant 0 : i32
    %c0_i32_1 = arith.constant 0 : i32
    %c0_i32_2 = arith.constant 0 : i32
    return %c0_i32, %c0_i32_0, %c0_i32_1 : i32, i32, i32
  }
  func.func @transform_5(%arg0: i32) -> (i32, i32, i32) {
    %c0_i32 = arith.constant 0 : i32
    %c0_i32_0 = arith.constant 0 : i32
    %c0_i32_1 = arith.constant 0 : i32
    %c0_i32_2 = arith.constant 0 : i32
    return %c0_i32, %c0_i32_0, %c0_i32_1 : i32, i32, i32
  }
  func.func @transform_6(%arg0: i32) -> (i32, i32, i32) {
    %c0_i32 = arith.constant 0 : i32
    %c0_i32_0 = arith.constant 0 : i32
    %c0_i32_1 = arith.constant 0 : i32
    return %arg0, %c0_i32, %c0_i32_0 : i32, i32, i32
  }
}

</mosaic_0001>

<bundles_post_ra>
// kernel: tpu_custom_call.1
= control target key start
LH: loop header
LB: loop body
LE: loop exit
PB: predicated region body
PF: predicated region fallthrough
CT: control target
= control target key end

     0   :  { %11 = vsyncpa [#allocation3], 0  ;;  %s1756_s0 = inlined_call_operand.vmem [shape: f32[2,4,256], index: 0, kind: input, shape index: {}]   ;;  %s1757_s1 = inlined_call_operand.vmem [shape: f32[2,4,256], index: 1, kind: input, shape index: {}]   ;;  %s1758_s2 = inlined_call_operand.vmem [shape: f32[4,2,4], index: 2, kind: input, shape index: {}]   ;;  %s1759_s3 = inlined_call_operand.vmem [shape: f32[4,4,2], index: 3, kind: input, shape index: {}]   ;;  %s1760_s4 = inlined_call_operand.vmem [shape: f32[4,2,1], index: 4, kind: input, shape index: {}]   ;;  %s1761_s5 = inlined_call_operand.vmem [shape: f32[4,4,1], index: 5, kind: input, shape index: {}]   ;;  %s1762_s6 = inlined_call_operand.hbm [shape: f32[2,4,256], index: 6, kind: output, shape index: {}]  }
   0x1   :  { %13 = vsyncpa [#allocation3 + $0x1], 0  ;;  %s1466_s21 = smov 0   ;;  %s1468_s22 = smov 0  }
   0x2   :  { %s1470_s23 = smov 0   ;;  %s1472_s24 = smov 0  }
   0x3 LB: > { %s1487_s25 = sadd.s32 4294967295, %s1427_s24   ;;  %s1213_s26 = sadd.s32 4294967294, %s1427_s24   ;;  %s1427_s24 = sphi %s1472_s24, %s1768_s24   ;;  %s1423_s23 = sphi %s1470_s23, %s1767_s23   ;;  %s1419_s22 = sphi %s1468_s22, %s1766_s22   ;;  %s1415_s21 = sphi %s1466_s21, %s1765_s21  }
   0x4   : > { %s1491_s27 = sadd.s32 1, %s1427_s24   ;;  %s162_s28 = sadd.s32 1, %s1423_s23 }
   0x5   : > { %s159_s29 = ssub.s32 %s1427_s24, %s1491_s27  ;;  %p172_p0 = scmp.ne.s32.totalorder %s1423_s23, %s1419_s22 }
   0x6   : > { %p160_p1 = scmp.eq.s32.totalorder %s159_s29, 0  ;;  %p173_p2 = scmp.eq.s32.totalorder %s1487_s25, 1 }
   0x7   : > { %p178_p3 = scmp.ne.s32.totalorder %s1419_s22, %s1415_s21  ;;  %p179_p4 = scmp.eq.s32.totalorder %s1213_s26, 1 }
   0x8   : > { %s1502_s30 = scalar_select %p160_p1, %s1423_s23, %s162_s28  }
   0x9   : > { %p1504_p5 = por %p173_p2, %p172_p0  ;;  %p1508_p6 = por %p179_p4, %p178_p3 }
   0xa   : > { %p1216_p7 = scmp.ge.s32.totalorder %s1427_s24, 1  ;;  %p225_p8 = scmp.lt.s32.totalorder %s1427_s24, 3 }
   0xc   : > { %p226_p9 = pnand %p1216_p7, %p225_p8 }
   0xd   : > { %p260_p10 = scmp.lt.s32.totalorder (!%p226_p9), %s1487_s25, 1  ;;  %v302_v0 = vlaneseq (!%p226_p9)  ;;  %v1429_v2 = vmov (!%p226_p9), 0   ;;  %v1222_v3 = vld [vmem:[%s1758_s2 + $0x2] sm:$0x3] (!%p226_p9)  ;;  %v1225_v5 = vld [vmem:[%s1759_s3 + $0x4] sm:$0xf] (!%p226_p9) }
   0xe   : > { %229 = sbr.rel (%p226_p9) target bundleno = 773 (0x305), region = 44  ;;  %1298 = vset.pattern.permute.xlu0 (!%p226_p9), %v1429_v2  ;;  %1299 = vset.pattern.permute.xlu1 (!%p226_p9), %v1429_v2  ;;  %vm323_vm0 = vcmask (!%p226_p9), 1043456   ;;  %v274_v21 = vld [vmem:[%s1758_s2] sm:$0x3] (!%p226_p9)  ;;  %v1228_v49 = vld [vmem:[%s1760_s4 + $0x2] sm:$0x3] (!%p226_p9) }
   0xf   : > { %v303_v1 = vshrl.u32 (!%p226_p9), %v302_v0, 7  ;;  %v281_v25 = vld [vmem:[%s1759_s3] sm:$0xf] (!%p226_p9)  ;;  %v528_v53 = vrot.slane (!%p226_p9), %v1228_v49, 1  ;;  %vm400_vm1 = vcmask (!%p226_p9), 1041409   ;;  %vm572_vm2 = vcmask (!%p226_p9), 1024  }
  0x10   : > { %v288_v26 = vld [vmem:[%s1760_s4] sm:$0x3] (!%p226_p9)  ;;  %vm414_vm3 = vcmask (!%p226_p9), 1041408   ;;  %vm703_vm4 = vcmask (!%p226_p9), 1045509   ;;  %vm706_vm5 = vcmask (!%p226_p9), 1042434   ;;  %vm708_vm6 = vcmask (!%p226_p9), 1046534  }
  0x11   : > { %v1519_v4 = vsub.s32 (!%p226_p9), 0, %v303_v1  ;;  %v1538_v9 = vsub.s32 (!%p226_p9), 1, %v303_v1  ;;  %v1554_v17 = vsub.s32 (!%p226_p9), 2, %v303_v1  ;;  %v1557_v19 = vsub.s32 (!%p226_p9), 3, %v303_v1  ;;  %v295_v31 = vld [vmem:[%s1761_s5] sm:$0xf] (!%p226_p9) }
  0x12   : > { %vm711_vm7 = vcmask (!%p226_p9), 1043459   ;;  %vm713_vm8 = vcmask (!%p226_p9), 1047559   ;;  %s257_s26 = sand.u32 (!%p226_p9), 1, %s1419_s22   ;;  %s1257_s29 = sshll.u32 (!%p226_p9), %s1487_s25, 7 }
  0x13   : > { %v500_v8 = vrot.slane (!%p226_p9), %v1222_v3, %v1519_v4  ;;  %v545_v11 = vrot.slane (!%p226_p9), %v1225_v5, %v1538_v9  ;;  %v538_v16 = vrot.slane (!%p226_p9), %v1225_v5, %v1519_v4  ;;  %v552_v18 = vrot.slane (!%p226_p9), %v1225_v5, %v1554_v17  ;;  %s1217_s28 = sshll.u32 (!%p226_p9), %s257_s26, 3  ;;  %s1714_s13 = scalar_lea.hbm (!%p226_p9), %s1762_s6, %s1257_s29 }
  0x14   : > { %v559_v20 = vrot.slane (!%p226_p9), %v1225_v5, %v1557_v19  ;;  %v312_v22 = vrot.slane (!%p226_p9), %v274_v21, %v1538_v9  ;;  %v305_v23 = vrot.slane (!%p226_p9), %v274_v21, %v1519_v4  ;;  %v507_v24 = vrot.slane (!%p226_p9), %v1222_v3, %v1538_v9  ;;  %s1128_s14 = scalar_lea.sflag (!%p226_p9), [#allocation3], %s257_s26 }
  0x15   : > { %s261_s9 = scalar_select %p260_p10, %s1487_s25, 1  ;;  %502 = vbcast.lane.b32.xlu1 %v500_v8, 256  ;;  %v377_v27 = vrot.slane %v281_v25, %v1538_v9  ;;  %v370_v28 = vrot.slane %v281_v25, %v1519_v4  ;;  %v384_v29 = vrot.slane %v281_v25, %v1554_v17  ;;  %v391_v30 = vrot.slane %v281_v25, %v1557_v19 }
  0x16   : > { %s1430_s25 = smov [#allocation2]  }
  0x17   : > { %s1255_s12 = sshll.u32 %s261_s9, 3  ;;  %s259_s9 = scalar_lea.vmem [#allocation2], %s1217_s28 }
  0x18   : > { %s264_s15 = scalar_lea.vmem %s1756_s0, %s1255_s12  ;;  %s1527_s18 = scalar_lea.vmem %s1757_s1, %s1255_s12 }
  0x19   : > { %v1532_v6 = vld [vmem:[%s264_s15] sm:$0xff]  ;;  %547 = vbcast.lane.b32.xlu1 %v545_v11, 256  ;;  %s1142_s10 = sshll.u32 %s259_s9, 4  ;;  %s1716_s10 = int_to_ptr.vmem [resolvable:$true] %s1142_s10 }
  0x1a   : > { %v1535_v7 = vld [vmem:[%s1527_s18] sm:$0xff]  ;;  %s1365_s15 = scalar_lea.vmem %s1716_s10, 128 }
  0x1b   : > { %v1542_v10 = vadd.f32 %v1535_v7, %v1532_v6  ;;  %p1366_p11 = scmp.ne.s32.totalorder %s1716_s10, %s1365_s15 }
  0x1d   : > { %v1547_v12 = vcombine.high %v1542_v10, %v1542_v10  ;;  %v490_v13 = vsel %vm323_vm0, %v1542_v10, 0.0  ;;  %540 = vbcast.lane.b32.xlu1 %v538_v16, 256  ;;  %p1367_p12 = pnand %p1366_p11, %p1504_p5 }
  0x1f   : > { %v491_v14 = vsel %vm323_vm0, %v1547_v12, 0.0  ;;  %p1368_p13 = pneg %p1367_p12 }
  0x20   : > { %v492_v15 = vadd.f32 %v491_v14, %v490_v13 }
  0x21   : > { %554 = vbcast.lane.b32.xlu1 %v552_v18, 256 }
  0x22   : > { %493 = vadd.xlane.f32.xlu0 %v492_v15 }
  0x25   : > { %561 = vbcast.lane.b32.xlu1 %v559_v20, 256 }
  0x29   : > { %314 = vbcast.lane.b32.xlu1 %v312_v22, 256 }
  0x2d   : > { %307 = vbcast.lane.b32.xlu1 %v305_v23, 256 }
  0x31   : > { %379 = vbcast.lane.b32.xlu1 %v377_v27, 256 }
  0x35   : > { %372 = vbcast.lane.b32.xlu1 %v370_v28, 256  ;;  %v1231_v28 = vld [vmem:[%s1761_s5 + $0x4] sm:$0xf] }
  0x38   : > { %509 = vbcast.lane.b32.xlu0 %v507_v24, 256 }
  0x39   : > { %393 = vbcast.lane.b32.xlu1 %v391_v30, 256 }
  0x3c   : > { %354 = vperm.xlu0 %1298, %v288_v26  }
  0x40   : > { %386 = vbcast.lane.b32.xlu0 %v384_v29, 256 }
  0x44   : > { %473 = vperm.xlu0 %1298, %v295_v31  }
  0x87   : > { %v503_v33 = vpop.permute.xlu1 %502 }
  0x8b   : > { %v548_v40 = vpop.permute.xlu1 %547 }
  0x8f   : > { %v541_v48 = vpop.permute.xlu1 %540 }
  0x93   : > { %v555_v56 = vpop.permute.xlu1 %554 }
  0x97   : > { %v562_v62 = vpop.permute.xlu1 %561 }
  0xaf   : > { %v494_v32 = vpop.xlane.xlu0 %493 }
  0xb0   : > { %v496_v34 = vmul.f32 0.00390625, %v494_v32 }
  0xb2   : > { %v511_v35 = vmul.f32 %v503_v33, %v496_v34  ;;  %v602_v33 = vrot.slane %v1231_v28, 1 }
  0xb3   : > { %v510_v36 = vpop.permute.xlu0 %509 }
  0xb4   : > { %v513_v37 = vsel %vm323_vm0, %v511_v35, 0.0  ;;  %v512_v38 = vmul.f32 %v510_v36, %v496_v34 }
  0xb5   : > { %v514_v39 = vrot.slane %v513_v37, 4 }
  0xb6   : > { %v520_v41 = vsel %vm323_vm0, %v512_v38, 0.0 }
  0xb7   : > { %v515_v42 = vadd.f32 %v514_v39, %v513_v37  ;;  %v521_v43 = vrot.slane %v520_v41, 4 }
  0xb9   : > { %v516_v44 = vrot.slane %v515_v42, 2  ;;  %v522_v45 = vadd.f32 %v521_v43, %v520_v41  ;;  %v604_v41 = vrot.slane %v1231_v28, 3 }
  0xbb   : > { %v517_v46 = vadd.f32 %v516_v44, %v515_v42  ;;  %v523_v47 = vrot.slane %v522_v45, 2 }
  0xbd   : > { %v518_v50 = vrot.slane %v517_v46, 1  ;;  %v524_v51 = vadd.f32 %v523_v47, %v522_v45 }
  0xbf   : > { %v519_v52 = vadd.f32 %v518_v50, %v517_v46  ;;  %v525_v54 = vrot.slane %v524_v51, 1  ;;  %v1224_v46 = vld [vmem:[%s1758_s2 + $0x6] sm:$0x3] }
  0xc0   : > { %v913_v50 = vrot.slane %v1224_v46, %v1519_v4 }
  0xc1   : > { %v526_v55 = vadd.f32 %v525_v54, %v524_v51  ;;  %v531_v58 = vadd.f32 %v1228_v49, %v519_v52  ;;  %v920_v49 = vrot.slane %v1224_v46, %v1538_v9  ;;  %v1227_v51 = vld [vmem:[%s1759_s3 + $0xc] sm:$0xf] }
  0xc2   : > { %v958_v52 = vrot.slane %v1227_v51, %v1538_v9  ;;  %v965_v54 = vrot.slane %v1227_v51, %v1554_v17 }
  0xc3   : > { %v532_v57 = vadd.f32 %v528_v53, %v526_v55  ;;  %v533_v60 = vmax.f32 %v531_v58, 0.0  ;;  %v951_v53 = vrot.slane %v1227_v51, %v1519_v4  ;;  %v972_v55 = vrot.slane %v1227_v51, %v1557_v19 }
  0xc5   : > { %v534_v59 = vmax.f32 %v532_v57, 0.0 }
  0xc7   : > { %v565_v61 = vrot.slane %v534_v59, 7  ;;  %v1229_v59 = vld [vmem:[%s1760_s4 + $0x4] sm:$0x3] }
  0xc9   : > { %v566_v63 = vsel %vm400_vm1, %v565_v61, %v533_v60  ;;  %v1615_v60 = vld [vmem:[%s1759_s3 + $0x8] sm:$0xf] }
  0xca   : > { %v569_v0 = vmul.f32 %v566_v63, %v548_v40  ;;  %v568_v1 = vmul.f32 %v566_v63, %v541_v48  ;;  %v570_v2 = vmul.f32 %v566_v63, %v555_v56  ;;  %v571_v3 = vmul.f32 %v566_v63, %v562_v62  ;;  %v1223_v56 = vld [vmem:[%s1758_s2 + $0x4] sm:$0x3]  ;;  %v315_v63 = vpop.permute.xlu1 %314 }
  0xcb   : > { %v603_v40 = vrot.slane %v1231_v28, 2  ;;  %v729_v57 = vrot.slane %v1223_v56, %v1538_v9  ;;  %v722_v58 = vrot.slane %v1223_v56, %v1519_v4  ;;  %v786_v61 = vrot.slane %v1615_v60, %v1519_v4  ;;  %v1232_v4 = vld [vmem:[%s1761_s5 + $0x8] sm:$0xf] }
  0xcc   : > { %v580_v5 = vsel %vm572_vm2, %v569_v0, 0.0  ;;  %v573_v8 = vsel %vm572_vm2, %v568_v1, 0.0  ;;  %v587_v11 = vsel %vm572_vm2, %v570_v2, 0.0  ;;  %v594_v13 = vsel %vm572_vm2, %v571_v3, 0.0 }
  0xcd   : > { %v581_v14 = vrot.slane %v580_v5, 4  ;;  %v574_v15 = vrot.slane %v573_v8, 4  ;;  %v588_v16 = vrot.slane %v587_v11, 4  ;;  %v595_v18 = vrot.slane %v594_v13, 4 }
  0xce   : > { %v800_v62 = vrot.slane %v1615_v60, %v1554_v17  ;;  %v807_v0 = vrot.slane %v1615_v60, %v1557_v19  ;;  %v321_v1 = vmul.f32 %v315_v63, %v1542_v10  ;;  %v322_v2 = vmul.f32 %v1547_v12, %v315_v63  ;;  %v308_v3 = vpop.permute.xlu1 %307 }
  0xcf   : > { %v582_v20 = vadd.f32 %v581_v14, %v580_v5  ;;  %v575_v21 = vadd.f32 %v574_v15, %v573_v8  ;;  %v589_v22 = vadd.f32 %v588_v16, %v587_v11  ;;  %v596_v23 = vadd.f32 %v595_v18, %v594_v13 }
  0xd0   : > { %v338_v5 = vsel %vm323_vm0, %v321_v1, 0.0  ;;  %v345_v8 = vsel %vm323_vm0, %v322_v2, 0.0  ;;  %v319_v17 = vmul.f32 %v308_v3, %v1542_v10  ;;  %v320_v11 = vmul.f32 %v1547_v12, %v308_v3 }
  0xd1   : > { %v583_v24 = vrot.slane %v582_v20, 2  ;;  %v576_v25 = vrot.slane %v575_v21, 2  ;;  %v590_v26 = vrot.slane %v589_v22, 2  ;;  %v597_v27 = vrot.slane %v596_v23, 2 }
  0xd2   : > { %v339_v13 = vrot.slane %v338_v5, 4  ;;  %v346_v19 = vrot.slane %v345_v8, 4  ;;  %v324_v14 = vsel %vm323_vm0, %v319_v17, 0.0  ;;  %v331_v15 = vsel %vm323_vm0, %v320_v11, 0.0 }
  0xd3   : > { %v584_v29 = vadd.f32 %v583_v24, %v582_v20  ;;  %v577_v30 = vadd.f32 %v576_v25, %v575_v21  ;;  %v591_v31 = vadd.f32 %v590_v26, %v589_v22  ;;  %v598_v32 = vadd.f32 %v597_v27, %v596_v23 }
  0xd4   : > { %v340_v16 = vadd.f32 %v339_v13, %v338_v5  ;;  %v347_v18 = vadd.f32 %v346_v19, %v345_v8  ;;  %v325_v20 = vrot.slane %v324_v14, 4  ;;  %v332_v21 = vrot.slane %v331_v15, 4 }
  0xd5   : > { %v585_v34 = vrot.slane %v584_v29, 1  ;;  %v578_v35 = vrot.slane %v577_v30, 1  ;;  %v592_v36 = vrot.slane %v591_v31, 1  ;;  %v599_v37 = vrot.slane %v598_v32, 1 }
  0xd6   : > { %v341_v22 = vrot.slane %v340_v16, 2  ;;  %v348_v23 = vrot.slane %v347_v18, 2  ;;  %v326_v24 = vadd.f32 %v325_v20, %v324_v14  ;;  %v333_v25 = vadd.f32 %v332_v21, %v331_v15 }
  0xd7   : > { %v586_v38 = vadd.f32 %v585_v34, %v584_v29  ;;  %v579_v39 = vadd.f32 %v578_v35, %v577_v30  ;;  %v593_v44 = vadd.f32 %v592_v36, %v591_v31  ;;  %v600_v45 = vadd.f32 %v599_v37, %v598_v32 }
  0xd8   : > { %v342_v26 = vadd.f32 %v341_v22, %v340_v16  ;;  %v349_v27 = vadd.f32 %v348_v23, %v347_v18  ;;  %v334_v29 = vrot.slane %v333_v25, 2 }
  0xd9   : > { %v610_v42 = vadd.f32 %v602_v33, %v586_v38  ;;  %v609_v43 = vadd.f32 %v1231_v28, %v579_v39  ;;  %v611_v47 = vadd.f32 %v603_v40, %v593_v44  ;;  %v612_v48 = vadd.f32 %v604_v41, %v600_v45  ;;  %v355_v33 = vpop.permute.xlu0 %354 }
  0xda   : > { %v327_v28 = vrot.slane %v326_v24, 2  ;;  %v343_v12 = vrot.slane %v342_v26, 1  ;;  %v350_v30 = vrot.slane %v349_v27, 1  ;;  %v335_v32 = vadd.f32 %v334_v29, %v333_v25 }
  0xdb   : > { %620 = vperm.xlu1 %1299, %v610_v42   ;;  %615 = vperm.xlu0 %1298, %v609_v43   ;;  %v356_v38 = vrot.slane %v355_v33, 1  ;;  %v380_v43 = vpop.permute.xlu1 %379 }
  0xdc   : > { %v328_v31 = vadd.f32 %v327_v28, %v326_v24  ;;  %v344_v34 = vadd.f32 %v343_v12, %v342_v26  ;;  %v336_v36 = vrot.slane %v335_v32, 1  ;;  %v351_v37 = vadd.f32 %v350_v30, %v349_v27 }
  0xde   : > { %v329_v35 = vrot.slane %v328_v31, 1  ;;  %v337_v40 = vadd.f32 %v336_v36, %v335_v32  ;;  %v361_v41 = vadd.f32 %v356_v38, %v344_v34  ;;  %v362_v42 = vadd.f32 %v356_v38, %v351_v37 }
  0xdf   : > { %625 = vperm.xlu1 %1299, %v611_v47   ;;  %630 = vperm.xlu0 %1298, %v612_v48  }
  0xe0   : > { %v330_v39 = vadd.f32 %v329_v35, %v328_v31  ;;  %v360_v45 = vadd.f32 %v355_v33, %v337_v40  ;;  %v365_v46 = vmax.f32 %v361_v41, 0.0  ;;  %v366_v47 = vmax.f32 %v362_v42, 0.0 }
  0xe2   : > { %v359_v44 = vadd.f32 %v355_v33, %v330_v39  ;;  %v402_v51 = vrot.slane %v366_v47, 7 }
  0xe3   : > { %922 = vbcast.lane.b32.xlu0 %v920_v49, 256  ;;  %v364_v49 = vmax.f32 %v360_v45, 0.0 }
  0xe4   : > { %v363_v48 = vmax.f32 %v359_v44, 0.0 }
  0xe7   : > { %915 = vbcast.lane.b32.xlu0 %v913_v50, 256  ;;  %v399_v50 = vrot.slane %v365_v46, 7 }
  0xeb   : > { %960 = vbcast.lane.b32.xlu0 %v958_v52, 256  ;;  %v373_v52 = vpop.permute.xlu1 %372 }
  0xef   : > { %953 = vbcast.lane.b32.xlu0 %v951_v53, 256  ;;  %v401_v53 = vsel %vm400_vm1, %v399_v50, %v363_v48 }
  0xf3   : > { %967 = vbcast.lane.b32.xlu0 %v965_v54, 256  ;;  %v403_v54 = vsel %vm400_vm1, %v402_v51, %v364_v49 }
  0xf4   : > { %v409_v56 = vmul.f32 %v403_v54, %v380_v43 }
  0xf6   : > { %v436_v63 = vsel %vm414_vm3, %v409_v56, 0.0 }
  0xf7   : > { %974 = vbcast.lane.b32.xlu0 %v972_v55, 256  ;;  %v408_v55 = vmul.f32 %v401_v53, %v380_v43  ;;  %v437_v17 = vrot.slane %v436_v63, 4 }
  0xf9   : > { %v438_v22 = vadd.f32 %v437_v17, %v436_v63 }
  0xfb   : > { %731 = vbcast.lane.b32.xlu0 %v729_v57, 256  ;;  %v406_v57 = vmul.f32 %v401_v53, %v373_v52  ;;  %v439_v12 = vrot.slane %v438_v22, 2 }
  0xfd   : > { %v415_v2 = vsel %vm414_vm3, %v406_v57, 0.0  ;;  %v440_v37 = vadd.f32 %v439_v12, %v438_v22 }
  0xfe   : > { %v416_v11 = vrot.slane %v415_v2, 4 }
  0xff   : > { %724 = vbcast.lane.b32.xlu0 %v722_v58, 256  ;;  %v407_v58 = vmul.f32 %v403_v54, %v373_v52  ;;  %v441_v47 = vrot.slane %v440_v37, 1 }
 0x100   : > { %v417_v23 = vadd.f32 %v416_v11, %v415_v2 }
 0x101   : > { %v422_v3 = vsel %vm414_vm3, %v407_v58, 0.0 }
 0x102   : > { %v423_v13 = vrot.slane %v422_v3, 4  ;;  %v418_v30 = vrot.slane %v417_v23, 2 }
 0x103   : > { %770 = vperm.xlu0 %1298, %v1229_v59   ;;  %v394_v59 = vpop.permute.xlu1 %393 }
 0x104   : > { %v424_v24 = vadd.f32 %v423_v13, %v422_v3  ;;  %v419_v38 = vadd.f32 %v418_v30, %v417_v23 }
 0x106   : > { %v425_v31 = vrot.slane %v424_v24, 2  ;;  %v420_v48 = vrot.slane %v419_v38, 1 }
 0x107   : > { %788 = vbcast.lane.b32.xlu0 %v786_v61, 256  ;;  %v387_v61 = vpop.permute.xlu0 %386 }
 0x108   : > { %v410_v1 = vmul.f32 %v401_v53, %v387_v61  ;;  %v411_v5 = vmul.f32 %v403_v54, %v387_v61  ;;  %v426_v39 = vadd.f32 %v425_v31, %v424_v24  ;;  %v421_v56 = vadd.f32 %v420_v48, %v419_v38 }
 0x10a   : > { %v443_v14 = vsel %vm414_vm3, %v410_v1, 0.0  ;;  %v450_v15 = vsel %vm414_vm3, %v411_v5, 0.0  ;;  %v427_v49 = vrot.slane %v426_v39, 1 }
 0x10b   : > { %802 = vbcast.lane.b32.xlu0 %v800_v62, 256  ;;  %v429_v62 = vsel %vm414_vm3, %v408_v55, 0.0  ;;  %v444_v21 = vrot.slane %v443_v14, 4  ;;  %v451_v25 = vrot.slane %v450_v15, 4  ;;  %v474_v46 = vpop.permute.xlu0 %473  ;;  %v442_v55 = vadd.f32 %v441_v47, %v440_v37 }
 0x10c   : > { %v430_v8 = vrot.slane %v429_v62, 4  ;;  %v475_v52 = vrot.slane %v474_v46, 1  ;;  %v428_v57 = vadd.f32 %v427_v49, %v426_v39  ;;  %v476_v61 = vrot.slane %v474_v46, 2 }
 0x10d   : > { %v445_v29 = vadd.f32 %v444_v21, %v443_v14  ;;  %v452_v32 = vadd.f32 %v451_v25, %v450_v15  ;;  %v477_v1 = vrot.slane %v474_v46, 3  ;;  %v482_v3 = vadd.f32 %v474_v46, %v421_v56 }
 0x10e   : > { %v431_v18 = vadd.f32 %v430_v8, %v429_v62  ;;  %v485_v2 = vadd.f32 %v475_v52, %v442_v55  ;;  %v483_v5 = vadd.f32 %v474_v46, %v428_v57 }
 0x10f   : > { %809 = vbcast.lane.b32.xlu0 %v807_v0, 256  ;;  %v412_v0 = vmul.f32 %v401_v53, %v394_v59  ;;  %v446_v36 = vrot.slane %v445_v29, 2  ;;  %v453_v40 = vrot.slane %v452_v32, 2 }
 0x110   : > { %v432_v27 = vrot.slane %v431_v18, 2 }
 0x111   : > { %v457_v19 = vsel %vm414_vm3, %v412_v0, 0.0  ;;  %v447_v43 = vadd.f32 %v446_v36, %v445_v29  ;;  %v454_v45 = vadd.f32 %v453_v40, %v452_v32 }
 0x112   : > { %v458_v20 = vrot.slane %v457_v19, 4  ;;  %v433_v34 = vadd.f32 %v432_v27, %v431_v18 }
 0x113   : > { %887 = vperm.xlu0 %1298, %v1232_v4   ;;  %v413_v4 = vmul.f32 %v403_v54, %v394_v59  ;;  %v448_v53 = vrot.slane %v447_v43, 1  ;;  %v455_v58 = vrot.slane %v454_v45, 1 }
 0x114   : > { %v459_v28 = vadd.f32 %v458_v20, %v457_v19  ;;  %v434_v44 = vrot.slane %v433_v34, 1 }
 0x115   : > { %v464_v16 = vsel %vm414_vm3, %v413_v4, 0.0  ;;  %v449_v63 = vadd.f32 %v448_v53, %v447_v43  ;;  %v456_v4 = vadd.f32 %v455_v58, %v454_v45 }
 0x116   : > { %v465_v26 = vrot.slane %v464_v16, 4  ;;  %v460_v35 = vrot.slane %v459_v28, 2  ;;  %v435_v51 = vadd.f32 %v434_v44, %v433_v34 }
 0x117   : > { %v487_v23 = vadd.f32 %v476_v61, %v456_v4 }
 0x118   : > { %v466_v33 = vadd.f32 %v465_v26, %v464_v16  ;;  %v461_v42 = vadd.f32 %v460_v35, %v459_v28  ;;  %v484_v62 = vadd.f32 %v475_v52, %v435_v51  ;;  %v486_v16 = vadd.f32 %v476_v61, %v449_v63 }
 0x11a   : > { %v467_v41 = vrot.slane %v466_v33, 2  ;;  %v462_v54 = vrot.slane %v461_v42, 1 }
 0x11c   : > { %v468_v50 = vadd.f32 %v467_v41, %v466_v33  ;;  %v463_v0 = vadd.f32 %v462_v54, %v461_v42 }
 0x11e   : > { %v469_v59 = vrot.slane %v468_v50, 1  ;;  %v488_v18 = vadd.f32 %v477_v1, %v463_v0 }
 0x120   : > { %v470_v11 = vadd.f32 %v469_v59, %v468_v50 }
 0x122   : > { %v489_v27 = vadd.f32 %v477_v1, %v470_v11 }
 0x15a   : > { %v621_v8 = vpop.permute.xlu1 %620  ;;  %v616_v17 = vpop.permute.xlu0 %615 }
 0x15b   : > { %v635_v13 = vadd.f32 %v621_v8, %v484_v62  ;;  %v636_v19 = vadd.f32 %v621_v8, %v485_v2  ;;  %v633_v14 = vadd.f32 %v616_v17, %v482_v3  ;;  %v634_v15 = vadd.f32 %v616_v17, %v483_v5 }
 0x15c   : > { %v1650_v17 = vsub.f32 %v1532_v6, %v1535_v7 }
 0x15d   : > { %v1236_v20 = vmul.f32 -1.442695, %v635_v13  ;;  %v1237_v21 = vmul.f32 -1.442695, %v636_v19  ;;  %v1234_v22 = vmul.f32 -1.442695, %v633_v14 }
 0x15e   : > { %v1235_v24 = vmul.f32 -1.442695, %v634_v15  ;;  %v626_v25 = vpop.permute.xlu1 %625  ;;  %v631_v26 = vpop.permute.xlu0 %630 }
 0x15f   : > { %1300 = vpow2.f32 %v1236_v20  ;;  %v637_v28 = vadd.f32 %v626_v25, %v486_v16  ;;  %v638_v29 = vadd.f32 %v626_v25, %v487_v23  ;;  %v639_v12 = vadd.f32 %v631_v26, %v488_v18 }
 0x160   : > { %1302 = vpow2.f32 %v1237_v21  ;;  %v640_v30 = vadd.f32 %v631_v26, %v489_v27 }
 0x161   : > { %1304 = vpow2.f32 %v1234_v22  ;;  %v1238_v31 = vmul.f32 -1.442695, %v637_v28  ;;  %v1239_v32 = vmul.f32 -1.442695, %v638_v29  ;;  %v1240_v33 = vmul.f32 -1.442695, %v639_v12 }
 0x162   : > { %1306 = vpow2.f32 %v1235_v24  ;;  %v1241_v34 = vmul.f32 -1.442695, %v640_v30  ;;  %v923_v21 = vpop.permute.xlu0 %922 }
 0x163   : > { %1308 = vpow2.f32 %v1238_v31 }
 0x164   : > { %1310 = vpow2.f32 %v1239_v32 }
 0x165   : > { %1312 = vpow2.f32 %v1240_v33 }
 0x166   : > { %1314 = vpow2.f32 %v1241_v34  ;;  %v916_v22 = vpop.permute.xlu0 %915 }
 0x169   : > { %v1301_v35 = vpop.eup %1300 }
 0x16a   : > { %v1303_v36 = vpop.eup %1302  ;;  %v667_v37 = vadd.f32 1.0, %v1301_v35  ;;  %v961_v28 = vpop.permute.xlu0 %960 }
 0x16b   : > { %v1305_v38 = vpop.eup %1304  ;;  %v668_v39 = vadd.f32 1.0, %v1303_v36 }
 0x16c   : > { %v1307_v40 = vpop.eup %1306  ;;  %1316 = vrcp.f32 %v667_v37  ;;  %v665_v41 = vadd.f32 1.0, %v1305_v38 }
 0x16d   : > { %v1309_v42 = vpop.eup %1308  ;;  %1318 = vrcp.f32 %v668_v39  ;;  %v666_v43 = vadd.f32 1.0, %v1307_v40 }
 0x16e   : > { %v1311_v44 = vpop.eup %1310  ;;  %1320 = vrcp.f32 %v665_v41  ;;  %v669_v45 = vadd.f32 1.0, %v1309_v42 }
 0x16f   : > { %v1313_v46 = vpop.eup %1312  ;;  %1322 = vrcp.f32 %v666_v43  ;;  %v670_v47 = vadd.f32 1.0, %v1311_v44 }
 0x170   : > { %v1315_v48 = vpop.eup %1314  ;;  %1324 = vrcp.f32 %v669_v45  ;;  %v671_v49 = vadd.f32 1.0, %v1313_v46 }
 0x171   : > { %1326 = vrcp.f32 %v670_v47  ;;  %v672_v50 = vadd.f32 1.0, %v1315_v48 }
 0x172   : > { %1328 = vrcp.f32 %v671_v49 }
 0x173   : > { %1330 = vrcp.f32 %v672_v50 }
 0x176   : > { %v1317_v51 = vpop.eup %1316 }
 0x177   : > { %v1319_v52 = vpop.eup %1318 }
 0x178   : > { %v1321_v53 = vpop.eup %1320  ;;  %v698_v54 = vcombine.low %v1317_v51, %v1319_v52 }
 0x179   : > { %v1323_v55 = vpop.eup %1322 }
 0x17a   : > { %v1325_v56 = vpop.eup %1324  ;;  %v701_v57 = vrot.slane %v698_v54, 7  ;;  %v697_v58 = vcombine.low %v1321_v53, %v1323_v55 }
 0x17b   : > { %v1327_v59 = vpop.eup %1326 }
 0x17c   : > { %v1329_v61 = vpop.eup %1328  ;;  %v702_v62 = vsel %vm400_vm1, %v701_v57, %v697_v58  ;;  %v699_v63 = vcombine.low %v1325_v56, %v1327_v59 }
 0x17d   : > { %v1331_v0 = vpop.eup %1330  ;;  %v704_v3 = vsel %vm703_vm4, %v701_v57, %v702_v62 }
 0x17e   : > { %v705_v1 = vrot.slane %v699_v63, 6  ;;  %v700_v2 = vcombine.low %v1329_v61, %v1331_v0 }
 0x180   : > { %v707_v5 = vsel %vm706_vm5, %v705_v1, %v704_v3  ;;  %v710_v4 = vrot.slane %v700_v2, 5  ;;  %v1233_v2 = vld [vmem:[%s1761_s5 + $0xc] sm:$0xf] }
 0x181   : > { %v709_v8 = vsel %vm708_vm6, %v705_v1, %v707_v5 }
 0x182   : > { %v712_v11 = vsel %vm711_vm7, %v710_v4, %v709_v8 }
 0x183   : > { %v714_v13 = vsel %vm713_vm8, %v710_v4, %v712_v11 }
 0x184   : > { %v716_v19 = vmul.f32 %v714_v13, %v1542_v10  ;;  %v793_v10 = vrot.slane %v1615_v60, %v1538_v9  ;;  %v1230_v9 = vld [vmem:[%s1760_s4 + $0x6] sm:$0x3]  ;;  %v954_v60 = vpop.permute.xlu0 %953 }
 0x185   : > { %v941_v36 = vrot.slane %v1230_v9, 1 }
 0x186   : > { %v717_v14 = vmul.f32 %v716_v19, %v1650_v17 }
 0x188   : > { %v1657_v15 = vadd.f32 %v717_v14, %v1535_v7  ;;  %v968_v41 = vpop.permute.xlu0 %967 }
 0x18a   : > { %v1661_v16 = vcombine.high %v1657_v15, %v1657_v15  ;;  %v904_v18 = vsel %vm323_vm0, %v1657_v15, 0.0 }
 0x18c   : > { %v905_v6 = vsel %vm323_vm0, %v1661_v16, 0.0  ;;  %v975_v47 = vpop.permute.xlu0 %974 }
 0x18d   : > { %v906_v20 = vadd.f32 %v905_v6, %v904_v18  ;;  %v1014_v18 = vrot.slane %v1233_v2, 1 }
 0x18f   : > { %907 = vadd.xlane.f32.xlu1 %v906_v20 }
 0x1a0   : > { %795 = vbcast.lane.b32.xlu1 %v793_v10, 256 }
 0x21c   : > { %v908_v7 = vpop.xlane.xlu1 %907 }
 0x21d   : > { %v909_v23 = vmul.f32 0.00390625, %v908_v7 }
 0x21f   : > { %v924_v24 = vmul.f32 %v916_v22, %v909_v23  ;;  %v925_v25 = vmul.f32 %v923_v21, %v909_v23  ;;  %v1015_v23 = vrot.slane %v1233_v2, 2 }
 0x221   : > { %v926_v26 = vsel %vm323_vm0, %v924_v24, 0.0  ;;  %v933_v27 = vsel %vm323_vm0, %v925_v25, 0.0  ;;  %v1016_v24 = vrot.slane %v1233_v2, 3 }
 0x222   : > { %v927_v29 = vrot.slane %v926_v26, 4  ;;  %v934_v12 = vrot.slane %v933_v27, 4 }
 0x224   : > { %v928_v30 = vadd.f32 %v927_v29, %v926_v26  ;;  %v935_v31 = vadd.f32 %v934_v12, %v933_v27 }
 0x226   : > { %v929_v32 = vrot.slane %v928_v30, 2  ;;  %v936_v33 = vrot.slane %v935_v31, 2 }
 0x228   : > { %v930_v34 = vadd.f32 %v929_v32, %v928_v30  ;;  %v937_v35 = vadd.f32 %v936_v33, %v935_v31  ;;  %v732_v30 = vpop.permute.xlu0 %731 }
 0x229   : > { %v738_v31 = vmul.f32 %v732_v30, %v1657_v15  ;;  %v739_v32 = vmul.f32 %v1661_v16, %v732_v30 }
 0x22a   : > { %v931_v37 = vrot.slane %v930_v34, 1  ;;  %v938_v38 = vrot.slane %v937_v35, 1 }
 0x22b   : > { %v754_v33 = vsel %vm323_vm0, %v738_v31, 0.0 }
 0x22c   : > { %v932_v39 = vadd.f32 %v931_v37, %v930_v34  ;;  %v939_v40 = vadd.f32 %v938_v38, %v937_v35  ;;  %v755_v35 = vrot.slane %v754_v33, 4 }
 0x22e   : > { %v944_v42 = vadd.f32 %v1230_v9, %v932_v39  ;;  %v945_v43 = vadd.f32 %v941_v36, %v939_v40  ;;  %v761_v9 = vsel %vm323_vm0, %v739_v32, 0.0  ;;  %v756_v39 = vadd.f32 %v755_v35, %v754_v33 }
 0x22f   : > { %v762_v37 = vrot.slane %v761_v9, 4 }
 0x230   : > { %v947_v44 = vmax.f32 %v945_v43, 0.0  ;;  %v946_v45 = vmax.f32 %v944_v42, 0.0 }
 0x232   : > { %v978_v46 = vrot.slane %v947_v44, 7  ;;  %v757_v44 = vrot.slane %v756_v39, 2 }
 0x234   : > { %v979_v48 = vsel %vm400_vm1, %v978_v46, %v946_v45 }
 0x235   : > { %v982_v49 = vmul.f32 %v979_v48, %v961_v28  ;;  %v981_v50 = vmul.f32 %v979_v48, %v954_v60  ;;  %v983_v51 = vmul.f32 %v979_v48, %v968_v41  ;;  %v984_v52 = vmul.f32 %v979_v48, %v975_v47  ;;  %v725_v60 = vpop.permute.xlu0 %724 }
 0x236   : > { %v736_v34 = vmul.f32 %v725_v60, %v1657_v15  ;;  %v737_v36 = vmul.f32 %v1661_v16, %v725_v60  ;;  %v763_v41 = vadd.f32 %v762_v37, %v761_v9  ;;  %v758_v48 = vadd.f32 %v757_v44, %v756_v39 }
 0x237   : > { %v992_v53 = vsel %vm572_vm2, %v982_v49, 0.0  ;;  %v985_v54 = vsel %vm572_vm2, %v981_v50, 0.0  ;;  %v999_v55 = vsel %vm572_vm2, %v983_v51, 0.0  ;;  %v1006_v56 = vsel %vm572_vm2, %v984_v52, 0.0 }
 0x238   : > { %v993_v57 = vrot.slane %v992_v53, 4  ;;  %v986_v58 = vrot.slane %v985_v54, 4  ;;  %v1000_v59 = vrot.slane %v999_v55, 4  ;;  %v1007_v61 = vrot.slane %v1006_v56, 4 }
 0x239   : > { %v740_v38 = vsel %vm323_vm0, %v736_v34, 0.0  ;;  %v747_v40 = vsel %vm323_vm0, %v737_v36, 0.0  ;;  %v764_v45 = vrot.slane %v763_v41, 2  ;;  %v759_v52 = vrot.slane %v758_v48, 1 }
 0x23a   : > { %v994_v62 = vadd.f32 %v993_v57, %v992_v53  ;;  %v987_v63 = vadd.f32 %v986_v58, %v985_v54  ;;  %v1001_v0 = vadd.f32 %v1000_v59, %v999_v55  ;;  %v1008_v1 = vadd.f32 %v1007_v61, %v1006_v56  ;;  %v771_v55 = vpop.permute.xlu0 %770 }
 0x23b   : > { %v741_v42 = vrot.slane %v740_v38, 4  ;;  %v748_v43 = vrot.slane %v747_v40, 4  ;;  %v765_v49 = vadd.f32 %v764_v45, %v763_v41  ;;  %v760_v56 = vadd.f32 %v759_v52, %v758_v48 }
 0x23c   : > { %v995_v3 = vrot.slane %v994_v62, 2  ;;  %v988_v5 = vrot.slane %v987_v63, 2  ;;  %v1002_v4 = vrot.slane %v1001_v0, 2  ;;  %v1009_v8 = vrot.slane %v1008_v1, 2 }
 0x23d   : > { %v742_v46 = vadd.f32 %v741_v42, %v740_v38  ;;  %v749_v47 = vadd.f32 %v748_v43, %v747_v40  ;;  %v766_v53 = vrot.slane %v765_v49, 1  ;;  %v772_v59 = vrot.slane %v771_v55, 1 }
 0x23e   : > { %v996_v11 = vadd.f32 %v995_v3, %v994_v62  ;;  %v989_v13 = vadd.f32 %v988_v5, %v987_v63  ;;  %v1003_v19 = vadd.f32 %v1002_v4, %v1001_v0  ;;  %v1010_v14 = vadd.f32 %v1009_v8, %v1008_v1  ;;  %v789_v4 = vpop.permute.xlu0 %788 }
 0x23f   : > { %v743_v50 = vrot.slane %v742_v46, 2  ;;  %v750_v51 = vrot.slane %v749_v47, 2  ;;  %v767_v57 = vadd.f32 %v766_v53, %v765_v49  ;;  %v777_v62 = vadd.f32 %v772_v59, %v760_v56 }
 0x240   : > { %v997_v6 = vrot.slane %v996_v11, 1  ;;  %v990_v20 = vrot.slane %v989_v13, 1  ;;  %v1004_v10 = vrot.slane %v1003_v19, 1  ;;  %v1011_v21 = vrot.slane %v1010_v14, 1 }
 0x241   : > { %v744_v16 = vadd.f32 %v743_v50, %v742_v46  ;;  %v751_v54 = vadd.f32 %v750_v51, %v749_v47  ;;  %v778_v63 = vadd.f32 %v772_v59, %v767_v57 }
 0x242   : > { %v998_v22 = vadd.f32 %v997_v6, %v996_v11  ;;  %v991_v7 = vadd.f32 %v990_v20, %v989_v13  ;;  %v1005_v27 = vadd.f32 %v1004_v10, %v1003_v19  ;;  %v1012_v28 = vadd.f32 %v1011_v21, %v1010_v14  ;;  %v803_v6 = vpop.permute.xlu0 %802  ;;  %v796_v10 = vpop.permute.xlu1 %795 }
 0x243   : > { %v745_v58 = vrot.slane %v744_v16, 1  ;;  %v752_v61 = vrot.slane %v751_v54, 1  ;;  %v782_v3 = vmax.f32 %v778_v63, 0.0 }
 0x244   : > { %v1022_v25 = vadd.f32 %v1014_v18, %v998_v22  ;;  %v1021_v26 = vadd.f32 %v1233_v2, %v991_v7  ;;  %v1023_v29 = vadd.f32 %v1015_v23, %v1005_v27  ;;  %v1024_v12 = vadd.f32 %v1016_v24, %v1012_v28 }
 0x245   : > { %v746_v0 = vadd.f32 %v745_v58, %v744_v16  ;;  %v753_v1 = vadd.f32 %v752_v61, %v751_v54  ;;  %v781_v2 = vmax.f32 %v777_v62, 0.0  ;;  %v817_v13 = vrot.slane %v782_v3, 7 }
 0x246   : > { %1032 = vperm.xlu1 %1299, %v1022_v25   ;;  %1027 = vperm.xlu0 %1298, %v1021_v26   ;;  %v810_v25 = vpop.permute.xlu0 %809 }
 0x247   : > { %v775_v5 = vadd.f32 %v771_v55, %v746_v0  ;;  %v776_v8 = vadd.f32 %v771_v55, %v753_v1  ;;  %v815_v11 = vrot.slane %v781_v2, 7 }
 0x249   : > { %v779_v19 = vmax.f32 %v775_v5, 0.0  ;;  %v780_v14 = vmax.f32 %v776_v8, 0.0 }
 0x24a   : > { %1037 = vperm.xlu1 %1299, %v1023_v29   ;;  %1042 = vperm.xlu0 %1298, %v1024_v12   ;;  %v888_v8 = vpop.permute.xlu0 %887 }
 0x24b   : > { %v816_v18 = vsel %vm400_vm1, %v815_v11, %v779_v19  ;;  %v818_v20 = vsel %vm400_vm1, %v817_v13, %v780_v14 }
 0x24c   : > { %v821_v21 = vmul.f32 %v816_v18, %v789_v4  ;;  %v822_v22 = vmul.f32 %v818_v20, %v789_v4  ;;  %v823_v7 = vmul.f32 %v816_v18, %v796_v10  ;;  %v824_v23 = vmul.f32 %v818_v20, %v796_v10 }
 0x24d   : > { %v825_v24 = vmul.f32 %v816_v18, %v803_v6  ;;  %v827_v27 = vmul.f32 %v816_v18, %v810_v25  ;;  %v828_v29 = vmul.f32 %v818_v20, %v810_v25  ;;  %v826_v31 = vmul.f32 %v818_v20, %v803_v6 }
 0x24e   : > { %v829_v26 = vsel %vm414_vm3, %v821_v21, 0.0  ;;  %v836_v28 = vsel %vm414_vm3, %v822_v22, 0.0  ;;  %v843_v12 = vsel %vm414_vm3, %v823_v7, 0.0  ;;  %v850_v30 = vsel %vm414_vm3, %v824_v23, 0.0 }
 0x24f   : > { %v830_v32 = vrot.slane %v829_v26, 4  ;;  %v857_v33 = vsel %vm414_vm3, %v825_v24, 0.0  ;;  %v837_v9 = vrot.slane %v836_v28, 4  ;;  %v871_v60 = vsel %vm414_vm3, %v827_v27, 0.0 }
 0x250   : > { %v844_v34 = vrot.slane %v843_v12, 4  ;;  %v851_v35 = vrot.slane %v850_v30, 4  ;;  %v878_v36 = vsel %vm414_vm3, %v828_v29, 0.0  ;;  %v864_v37 = vsel %vm414_vm3, %v826_v31, 0.0 }
 0x251   : > { %v831_v38 = vadd.f32 %v830_v32, %v829_v26  ;;  %v858_v39 = vrot.slane %v857_v33, 4  ;;  %v872_v40 = vrot.slane %v871_v60, 4  ;;  %v838_v41 = vadd.f32 %v837_v9, %v836_v28 }
 0x252   : > { %v879_v42 = vrot.slane %v878_v36, 4  ;;  %v845_v43 = vadd.f32 %v844_v34, %v843_v12  ;;  %v852_v44 = vadd.f32 %v851_v35, %v850_v30  ;;  %v865_v45 = vrot.slane %v864_v37, 4 }
 0x253   : > { %v832_v46 = vrot.slane %v831_v38, 2  ;;  %v859_v47 = vadd.f32 %v858_v39, %v857_v33  ;;  %v873_v48 = vadd.f32 %v872_v40, %v871_v60  ;;  %v839_v49 = vrot.slane %v838_v41, 2 }
 0x254   : > { %v880_v50 = vadd.f32 %v879_v42, %v878_v36  ;;  %v846_v51 = vrot.slane %v845_v43, 2  ;;  %v853_v52 = vrot.slane %v852_v44, 2  ;;  %v866_v53 = vadd.f32 %v865_v45, %v864_v37 }
 0x255   : > { %v833_v16 = vadd.f32 %v832_v46, %v831_v38  ;;  %v860_v54 = vrot.slane %v859_v47, 2  ;;  %v874_v55 = vrot.slane %v873_v48, 2  ;;  %v840_v56 = vadd.f32 %v839_v49, %v838_v41 }
 0x256   : > { %v881_v57 = vrot.slane %v880_v50, 2  ;;  %v847_v58 = vadd.f32 %v846_v51, %v845_v43  ;;  %v854_v59 = vadd.f32 %v853_v52, %v852_v44  ;;  %v867_v61 = vrot.slane %v866_v53, 2 }
 0x257   : > { %v834_v62 = vrot.slane %v833_v16, 1  ;;  %v875_v63 = vadd.f32 %v874_v55, %v873_v48  ;;  %v861_v0 = vadd.f32 %v860_v54, %v859_v47  ;;  %v841_v1 = vrot.slane %v840_v56, 1 }
 0x258   : > { %v848_v2 = vrot.slane %v847_v58, 1  ;;  %v855_v3 = vrot.slane %v854_v59, 1  ;;  %v882_v5 = vadd.f32 %v881_v57, %v880_v50  ;;  %v868_v4 = vadd.f32 %v867_v61, %v866_v53 }
 0x259   : > { %v835_v11 = vadd.f32 %v834_v62, %v833_v16  ;;  %v876_v13 = vrot.slane %v875_v63, 1  ;;  %v862_v19 = vrot.slane %v861_v0, 1  ;;  %v842_v14 = vadd.f32 %v841_v1, %v840_v56 }
 0x25a   : > { %v849_v18 = vadd.f32 %v848_v2, %v847_v58  ;;  %v856_v6 = vadd.f32 %v855_v3, %v854_v59  ;;  %v883_v20 = vrot.slane %v882_v5, 1  ;;  %v869_v10 = vrot.slane %v868_v4, 1 }
 0x25b   : > { %v889_v21 = vrot.slane %v888_v8, 1  ;;  %v896_v22 = vadd.f32 %v888_v8, %v835_v11  ;;  %v877_v7 = vadd.f32 %v876_v13, %v875_v63  ;;  %v863_v23 = vadd.f32 %v862_v19, %v861_v0 }
 0x25c   : > { %v897_v24 = vadd.f32 %v888_v8, %v842_v14  ;;  %v884_v27 = vadd.f32 %v883_v20, %v882_v5  ;;  %v891_v12 = vrot.slane %v888_v8, 3  ;;  %v890_v30 = vrot.slane %v888_v8, 2 }
 0x25d   : > { %v898_v25 = vadd.f32 %v889_v21, %v849_v18  ;;  %v899_v26 = vadd.f32 %v889_v21, %v856_v6  ;;  %v870_v31 = vadd.f32 %v869_v10, %v868_v4 }
 0x25e   : > { %v902_v34 = vadd.f32 %v891_v12, %v877_v7  ;;  %v900_v35 = vadd.f32 %v890_v30, %v863_v23  ;;  %v903_v39 = vadd.f32 %v891_v12, %v884_v27 }
 0x25f   : > { %v901_v43 = vadd.f32 %v890_v30, %v870_v31  ;;  %v1364_v31 = vld [vmem:[%s1527_s18] sm:$0xff]  ;;  %s1369_s18 = sshll.u32 %s1430_s25, 4  ;;  %s1370_s18 = int_to_ptr.vmem [resolvable:$false] %s1369_s18 }
 0x260   : > { %s1371_s16 = scalar_lea.vmem %s1370_s18, 256  ;;  %p1372_p0 = scmp.lt.s32.totalorder %s1716_s10, %s1370_s18 }
 0x261   : > { %p1373_p1 = scmp.lt.s32.totalorder %s1371_s16, %s1365_s15 }
 0x263   : > { %p1374_p2 = por %p1373_p1, %p1372_p0 }
 0x265   : > { %p1375_p3 = pnand %p1374_p2, %p1368_p13 }
 0x2c5   : > { %v1028_v28 = vpop.permute.xlu0 %1027  ;;  %v1033_v29 = vpop.permute.xlu1 %1032 }
 0x2c6   : > { %v1045_v32 = vadd.f32 %v1028_v28, %v896_v22  ;;  %v1046_v33 = vadd.f32 %v1028_v28, %v897_v24  ;;  %v1047_v9 = vadd.f32 %v1033_v29, %v898_v25  ;;  %v1048_v60 = vadd.f32 %v1033_v29, %v899_v26 }
 0x2c8   : > { %v1242_v36 = vmul.f32 -1.442695, %v1045_v32  ;;  %v1243_v37 = vmul.f32 -1.442695, %v1046_v33  ;;  %v1244_v38 = vmul.f32 -1.442695, %v1047_v9 }
 0x2c9   : > { %v1245_v40 = vmul.f32 -1.442695, %v1048_v60  ;;  %v1043_v41 = vpop.permute.xlu0 %1042  ;;  %v1038_v42 = vpop.permute.xlu1 %1037 }
 0x2ca   : > { %1332 = vpow2.f32 %v1242_v36  ;;  %v1051_v44 = vadd.f32 %v1043_v41, %v902_v34  ;;  %v1052_v45 = vadd.f32 %v1043_v41, %v903_v39  ;;  %v1049_v46 = vadd.f32 %v1038_v42, %v900_v35 }
 0x2cb   : > { %1334 = vpow2.f32 %v1243_v37  ;;  %v1050_v47 = vadd.f32 %v1038_v42, %v901_v43 }
 0x2cc   : > { %1336 = vpow2.f32 %v1244_v38  ;;  %v1248_v48 = vmul.f32 -1.442695, %v1051_v44  ;;  %v1249_v49 = vmul.f32 -1.442695, %v1052_v45  ;;  %v1246_v50 = vmul.f32 -1.442695, %v1049_v46 }
 0x2cd   : > { %1338 = vpow2.f32 %v1245_v40  ;;  %v1247_v51 = vmul.f32 -1.442695, %v1050_v47 }
 0x2ce   : > { %1340 = vpow2.f32 %v1248_v48 }
 0x2cf   : > { %1342 = vpow2.f32 %v1249_v49 }
 0x2d0   : > { %1344 = vpow2.f32 %v1246_v50 }
 0x2d1   : > { %1346 = vpow2.f32 %v1247_v51 }
 0x2d4   : > { %v1333_v52 = vpop.eup %1332 }
 0x2d5   : > { %v1335_v53 = vpop.eup %1334  ;;  %v1077_v16 = vadd.f32 1.0, %v1333_v52 }
 0x2d6   : > { %v1337_v54 = vpop.eup %1336  ;;  %v1078_v55 = vadd.f32 1.0, %v1335_v53 }
 0x2d7   : > { %v1339_v56 = vpop.eup %1338  ;;  %1348 = vrcp.f32 %v1077_v16  ;;  %v1079_v57 = vadd.f32 1.0, %v1337_v54 }
 0x2d8   : > { %v1341_v58 = vpop.eup %1340  ;;  %1350 = vrcp.f32 %v1078_v55  ;;  %v1080_v59 = vadd.f32 1.0, %v1339_v56 }
 0x2d9   : > { %v1343_v61 = vpop.eup %1342  ;;  %1352 = vrcp.f32 %v1079_v57  ;;  %v1083_v62 = vadd.f32 1.0, %v1341_v58 }
 0x2da   : > { %v1345_v63 = vpop.eup %1344  ;;  %1354 = vrcp.f32 %v1080_v59  ;;  %v1084_v0 = vadd.f32 1.0, %v1343_v61 }
 0x2db   : > { %v1347_v1 = vpop.eup %1346  ;;  %1356 = vrcp.f32 %v1083_v62  ;;  %v1081_v2 = vadd.f32 1.0, %v1345_v63 }
 0x2dc   : > { %1358 = vrcp.f32 %v1084_v0  ;;  %v1082_v3 = vadd.f32 1.0, %v1347_v1 }
 0x2dd   : > { %1360 = vrcp.f32 %v1081_v2 }
 0x2de   : > { %1362 = vrcp.f32 %v1082_v3 }
 0x2e1   : > { %v1349_v5 = vpop.eup %1348 }
 0x2e2   : > { %v1351_v4 = vpop.eup %1350 }
 0x2e3   : > { %v1353_v8 = vpop.eup %1352  ;;  %v1109_v6 = vcombine.low %v1349_v5, %v1351_v4 }
 0x2e4   : > { %v1355_v11 = vpop.eup %1354 }
 0x2e5   : > { %v1357_v13 = vpop.eup %1356  ;;  %v1110_v19 = vcombine.low %v1353_v8, %v1355_v11 }
 0x2e6   : > { %v1359_v14 = vpop.eup %1358 }
 0x2e7   : > { %v1361_v18 = vpop.eup %1360  ;;  %v1113_v20 = vrot.slane %v1110_v19, 7  ;;  %v1112_v22 = vcombine.low %v1357_v13, %v1359_v14 }
 0x2e8   : > { %v1363_v10 = vpop.eup %1362 }
 0x2e9   : > { %v1111_v21 = vcombine.low %v1361_v18, %v1363_v10  ;;  %v1114_v7 = vsel %vm400_vm1, %v1113_v20, %v1109_v6  ;;  %v1119_v26 = vrot.slane %v1112_v22, 5 }
 0x2ea   : > { %v1115_v24 = vsel %vm703_vm4, %v1113_v20, %v1114_v7 }
 0x2eb   : > { %v1116_v23 = vrot.slane %v1111_v21, 6 }
 0x2ed   : > { %v1117_v25 = vsel %vm706_vm5, %v1116_v23, %v1115_v24 }
 0x2ee   : > { %v1118_v27 = vsel %vm708_vm6, %v1116_v23, %v1117_v25 }
 0x2ef   : > { %v1120_v28 = vsel %vm711_vm7, %v1119_v26, %v1118_v27 }
 0x2f0   : > { %v1121_v29 = vsel %vm713_vm8, %v1119_v26, %v1120_v28 }
 0x2f1   : > { %v1123_v12 = vmul.f32 %v1121_v29, %v1657_v15 }
 0x2f3   : > { %v1124_v30 = vmul.f32 %v1123_v12, %v1650_v17 }
 0x2f5   : > { %v1125_v32 = vadd.f32 %v1364_v31, %v1124_v30 }
 0x2f7   : > { %1126 = vst [vmem:[%s259_s9] sm:$0xff] %v1125_v32 }
 0x2f8   : > { %1378 = shalt.err (!%p1375_p3)
}
 0x2f9   : > { %s1379_s17 = scalar_lea.hbm %s1714_s13, 128  ;;  %s1383_s26 = scalar_lea.hbm %s1762_s6, 256 }
 0x2fa   : > { %p1380_p4 = scmp.ne.s32.totalorder %s1714_s13, %s1379_s17  ;;  %p1384_p9 = scmp.lt.u32.totalorder %s1714_s13, %s1762_s6 }
 0x2fb   : > { %p1385_p10 = scmp.lt.u32.totalorder %s1383_s26, %s1379_s17  ;;  %p1387_p12 = scmp.lt.u32.totalorder %s1379_s17, %s1714_s13 }
 0x2fc   : > { %p1381_p7 = pnand %p1380_p4, %p1504_p5 }
 0x2fd   : > { %p1386_p11 = por %p1385_p10, %p1384_p9 }
 0x2fe   : > { %p1382_p8 = pneg %p1381_p7 }
 0x2ff   : > { %p1388_p13 = por %p1387_p12, %p1386_p11 }
 0x301   : > { %p1389_p0 = pnand %p1388_p13, %p1382_p8 }
 0x303   : > { %1392 = shalt.err (!%p1389_p0)
}
 0x304   : > { %1258 = dma.vmem_to_hbm [thread:$0]  (%p1504_p5), %s1716_s10, 128, %s1714_s13, %s1128_s14  }
 0x305 PF: > { %p1264_p1 = scmp.ge.s32.totalorder %s1427_s24, 2  ;;  %s1154_s9 = sand.u32 1, %s1415_s21  }
 0x306   : > { %s1155_s11 = scalar_lea.sflag [#allocation3], %s1154_s9 }
 0x307   : > { %p1261_p2 = pnand %p1264_p1, %p1508_p6 }
 0x309   : > { %1410 = dma.done.wait (!%p1261_p2), %s1155_s11, 128  }
 0x30a   : > { %1412 = vsyncadd (!%p1261_p2), %s1155_s11, 4294967168  ;;  %p16_p3 = scmp.ge.s32.totalorder %s1491_s27, 4   ;;  %s1765_s21 = smov %s1419_s22 }
 0x30b   : > { %s1766_s22 = smov %s1423_s23  ;;  %s1767_s23 = smov %s1502_s30 }
 0x30c   : > { %s1768_s24 = smov %s1491_s27  ;;  %18 = sbr.rel (!%p16_p3) target bundleno = 3 (0x3), region = 94 }
 0x313   :  { %1160 = vsyncpa [#allocation3], 1 }
 0x314   :  { %1162 = vsyncpa [#allocation3 + $0x1], 1 }

</bundles_post_ra>
